<compile_context>
chip_gen: v5e
topology: v5e:2x2
jax: 0.10.0
libtpu: 0.0.40
codegen_flags: <defaults>
</compile_context>

<pallas_src>
import jax
import jax.numpy as jnp
import numpy as np
from jax.experimental import pallas as pl
from jax.experimental.pallas import tpu as pltpu


# ---------------------------------------------------------------------------
# Reference forward: `return x` (no kernel — identity is free).
# ---------------------------------------------------------------------------
def torch_model_forward(x, fc1_w=None, fc1_b=None, out_w=None, out_b=None):
    """Mirror of TorchModel.forward: the Linear parameters are unused."""
    del fc1_w, fc1_b, out_w, out_b
    return x


# ---------------------------------------------------------------------------
# Materialized copy, preferred structure: one HBM -> HBM DMA.
# ---------------------------------------------------------------------------
def _dma_identity_kernel(x_hbm_ref, o_hbm_ref, sem):
    cp = pltpu.make_async_copy(x_hbm_ref, o_hbm_ref, sem)
    cp.start()
    cp.wait()


def torch_model_forward_pallas(x, fc1_w=None, fc1_b=None, out_w=None, out_b=None):
    """Identity forward as a single HBM->HBM DMA (no grid, no VMEM staging)."""
    del fc1_w, fc1_b, out_w, out_b
    return pl.pallas_call(
        _dma_identity_kernel,
        out_shape=jax.ShapeDtypeStruct(x.shape, x.dtype),
        in_specs=[pl.BlockSpec(memory_space=pl.ANY)],
        out_specs=pl.BlockSpec(memory_space=pl.ANY),
        scratch_shapes=[pltpu.SemaphoreType.DMA(())],
    )(x)


# ---------------------------------------------------------------------------
# Materialized copy, fallback structure: tiled VMEM round-trip.
# ---------------------------------------------------------------------------
def _identity_kernel(x_ref, o_ref):
    o_ref[...] = x_ref[...]


_SMALL_BYTES = 4 * 1024 * 1024         # below this: single block, one grid step
_TARGET_BLOCK_BYTES = 8 * 1024 * 1024  # 2 in + 2 out buffers -> <= 32 MiB VMEM


def _choose_blocks(B, F, itemsize):
    """Pick (tb, tf): contiguous full-lane row slabs of ~8 MiB when possible."""
    total = B * F * itemsize
    if total <= _SMALL_BYTES:
        return B, F                      # one full-array block, grid of 1
    row_align = max(8, 32 // itemsize)   # dtype-aware sublane pack (f32/bf16/int8)
    row_bytes = F * itemsize
    if row_align * row_bytes <= _TARGET_BLOCK_BYTES:
        # Row-only tiling, full lane extent -> one contiguous HBM slab per DMA.
        tb = (_TARGET_BLOCK_BYTES // row_bytes) // row_align * row_align
        return min(max(tb, row_align), B), F
    # Pathologically wide rows: minimal aligned row count, split the lane axis.
    tf = ((_TARGET_BLOCK_BYTES // (row_align * itemsize)) // 128) * 128
    return min(row_align, B), min(max(tf, 128), F)


def torch_model_forward_pallas_tiled(x, fc1_w=None, fc1_b=None, out_w=None, out_b=None):
    """Identity forward as a tiled, lane-dense VMEM copy (no I/O aliasing)."""
    del fc1_w, fc1_b, out_w, out_b
    B, F = x.shape
    tb, tf = _choose_blocks(B, F, x.dtype.itemsize)
    return pl.pallas_call(
        _identity_kernel,
        out_shape=jax.ShapeDtypeStruct((B, F), x.dtype),
        grid=(pl.cdiv(B, tb), pl.cdiv(F, tf)),
        in_specs=[pl.BlockSpec((tb, tf), lambda i, j: (i, j))],
        out_specs=pl.BlockSpec((tb, tf), lambda i, j: (i, j)),
        compiler_params=pltpu.CompilerParams(
            dimension_semantics=("parallel", "parallel"),
            vmem_limit_bytes=48 * 1024 * 1024,
        ),
    )(x)


# ---------------------------------------------------------------------------
# Parameter init matching nn.Linear shapes (kept for shape fidelity; unused).
# ---------------------------------------------------------------------------
def init_params(key, n_inputs, n_outputs, n_nodes):
    k1, k2, k3, k4 = jax.random.split(key, 4)
    fc1_w = jax.random.uniform(k1, (n_nodes, n_inputs), jnp.float32, -0.1, 0.1)
    fc1_b = jax.random.uniform(k2, (n_nodes,), jnp.float32, -0.1, 0.1)
    out_w = jax.random.uniform(k3, (n_outputs, n_nodes), jnp.float32, -0.1, 0.1)
    out_b = jax.random.uniform(k4, (n_outputs,), jnp.float32, -0.1, 0.1)
    return fc1_w, fc1_b, out_w, out_b


if __name__ == "__main__":
    # Small shapes consistent with the module (batch x nInputs input).
    n_inputs, n_outputs, n_layer, n_nodes = 256, 8, 1, 128
    batch = 128

    key = jax.random.PRNGKey(0)
    k_x, k_p = jax.random.split(key)
    x = jax.random.normal(k_x, (batch, n_inputs), dtype=jnp.float32)
    params = init_params(k_p, n_inputs, n_outputs, n_nodes)
    x_host = np.asarray(x)

    # Zero-overhead path: exact reference semantics (`return x`).
    y_fast = torch_model_forward(x, *params)
    assert y_fast is x

    # Preferred materialized copy: single HBM->HBM DMA.
    y_dma = jax.block_until_ready(torch_model_forward_pallas(x, *params))
    assert y_dma.shape == x_host.shape and y_dma.dtype == x.dtype
    assert np.array_equal(np.asarray(y_dma), x_host), "DMA identity mismatch"

    # Fallback materialized copy: tiled lane-dense VMEM pass.
    y_tiled = jax.block_until_ready(torch_model_forward_pallas_tiled(x, *params))
    assert y_tiled.shape == x_host.shape and y_tiled.dtype == x.dtype
    assert np.array_equal(np.asarray(y_tiled), x_host), "tiled identity mismatch"

    print("KERNEL_OK")
</pallas_src>

<mosaic_0001>
module attributes {stable_mosaic.version = 11 : i64} {
  func.func @_dma_identity_kernel(%arg0: memref<128x256xf32, #tpu.memory_space<any>>, %arg1: memref<128x256xf32, #tpu.memory_space<any>>, %arg2: memref<!tpu.dma_semaphore, #tpu.memory_space<semaphore_mem>>) attributes {dimension_semantics = [], scalar_prefetch = 0 : i64, scratch_operands = 1 : i64, tpu.core_type = #tpu.core_type<tc>} {
    tpu.enqueue_dma source(%arg0 : memref<128x256xf32, #tpu.memory_space<any>>) target(%arg1 : memref<128x256xf32, #tpu.memory_space<any>>) target_semaphore(%arg2 : memref<!tpu.dma_semaphore, #tpu.memory_space<semaphore_mem>>)
    tpu.wait_dma2 semaphore(%arg2 : memref<!tpu.dma_semaphore, #tpu.memory_space<semaphore_mem>>) src(%arg0 : memref<128x256xf32, #tpu.memory_space<any>>) dst(%arg1 : memref<128x256xf32, #tpu.memory_space<any>>)
    return
  }
}

</mosaic_0001>

<bundles_post_ra>
// kernel: tpu_custom_call.1
= control target key start
LH: loop header
LB: loop body
LE: loop exit
PB: predicated region body
PF: predicated region fallthrough
CT: control target
= control target key end

     0   :  { %s33_s12 = smov [#allocation2]   ;;  %s34_s13 = smov [#allocation3]   ;;  %s52_s0 = inlined_call_operand.hbm [shape: f32[128,256], index: 0, kind: input, shape index: {}]   ;;  %s53_s1 = inlined_call_operand.hbm [shape: f32[128,256], index: 1, kind: output, shape index: {}]  }
   0x1   :  { %s10_s8 = sshll.u32 %s52_s0, 4  ;;  %s12_s11 = sshll.u32 %s53_s1, 4  ;;  %s11_s8 = int_to_ptr.hbm [resolvable:$true] %s10_s8  ;;  %s13_s11 = int_to_ptr.hbm [resolvable:$true] %s12_s11 }
   0x2   :  { %s35_s14 = smov 0  }
   0x3   :  { %16 = dma.general %s11_s8, 4096, %s13_s11, %s33_s12, %s34_s13, [#allocation4], %s35_s14, 0  }
   0x4   :  { %31 = dma.done.wait [#allocation2], 4096 }
   0x5   :  { %32 = vsyncadd [#allocation2], 4294963200 }
   0x6   :  { %21 = vsyncmov [#allocation2] }
   0x9   :  { %s22_s15 = vpop.sfrf %21 }
   0xa   :  { %p27_p0 = scmp.ne.s32.totalorder %s22_s15, 0 }
   0xc   :  { %26 = shalt.err (%p27_p0)  }

</bundles_post_ra>
